<compile_context>
chip_gen: v7x
topology: tpu7x:2x2x1
jax: 0.10.0
libtpu: 0.0.40
codegen_flags: <defaults>
</compile_context>

<pallas_src>
from functools import partial

import jax
import jax.numpy as jnp
from jax.experimental import pallas as pl
from jax.experimental.pallas import tpu as pltpu

LAMBDA_OBJECT = 5.0
LAMBDA_NO_OBJECT = 10.0
LAMBDA_BOX = 5.0

LANES = 128          # lane width of the flattened-cell axis
R_MAX = 512          # max sublane rows per grid step (512*128 = 65536 cells)
SUBLANE_ROUND = 16   # row padding granularity (works for f32 and bf16 packing)


def _cdiv(a, b):
    return -(-a // b)


def _round_up(a, b):
    return _cdiv(a, b) * b


def _fold_to_8(x):
    """Sum groups of 8 sublane rows: (chunk, 128) -> (8, 128). Pure VPU adds."""
    rows = x.shape[0]
    out = x[0:8]
    for i in range(8, rows, 8):
        out = out + x[i:i + 8]
    return out


def _make_kernel(M, R, chunk):
    """Build the kernel closure for a given valid-cell count / tile geometry."""
    nchunks = R // chunk

    def kernel(anch_ref, pred_ref, tgt_ref, out_ref):
        # anch_ref: (A, 4) f32 in SMEM (scalar prefetch): [w, h, 1/w, 1/h]
        # pred_ref/tgt_ref: (1, 5, R, 128) tiles (storage dtype; math in f32)
        # out_ref: (1, 5, 8, 128) f32 per-anchor partial accumulators
        a = pl.program_id(0)
        t = pl.program_id(1)

        aw = anch_ref[a, 0]
        ah = anch_ref[a, 1]
        inv_aw = anch_ref[a, 2]
        inv_ah = anch_ref[a, 3]

        # constant per-chunk iotas for the validity mask (hoisted out of the loop)
        row = jax.lax.broadcasted_iota(jnp.int32, (chunk, LANES), 0)
        lane = jax.lax.broadcasted_iota(jnp.int32, (chunk, LANES), 1)
        rowlane = row * LANES + lane
        tile_base = t * (R * LANES)

        def chunk_body(c, acc):
            acc_nb, acc_nc, acc_ob, acc_oc, acc_sq = acc
            start = c * chunk
            if not isinstance(start, int):
                start = pl.multiple_of(start, chunk)
            sl = pl.ds(start, chunk)

            p0 = pred_ref[0, 0, sl, :].astype(jnp.float32)
            p1 = pred_ref[0, 1, sl, :].astype(jnp.float32)
            p2 = pred_ref[0, 2, sl, :].astype(jnp.float32)
            p3 = pred_ref[0, 3, sl, :].astype(jnp.float32)
            p4 = pred_ref[0, 4, sl, :].astype(jnp.float32)
            t0 = tgt_ref[0, 0, sl, :].astype(jnp.float32)
            t1 = tgt_ref[0, 1, sl, :].astype(jnp.float32)
            t2 = tgt_ref[0, 2, sl, :].astype(jnp.float32)
            t3 = tgt_ref[0, 3, sl, :].astype(jnp.float32)
            t4 = tgt_ref[0, 4, sl, :].astype(jnp.float32)

            # mask out padded cells (cell index >= M)
            cell = tile_base + start * LANES + rowlane
            valid = cell < M
            obj = jnp.logical_and(valid, t0 == 1.0)
            no_obj = jnp.logical_and(valid, t0 == 0.0)

            # shared stable-BCE pieces (one exp + one log1p per vreg, reused twice)
            relu0 = jnp.maximum(p0, 0.0)
            softplus0 = jnp.log1p(jnp.exp(-jnp.abs(p0)))
            noobj_bce = relu0 + softplus0          # BCEWithLogits(p0, 0)

            # decode predicted boxes (sigmoid via tanh: one EUP op each)
            bx = 0.5 * jnp.tanh(0.5 * p1) + 0.5
            by = 0.5 * jnp.tanh(0.5 * p2) + 0.5
            bw = jnp.exp(p3) * aw
            bh = jnp.exp(p4) * ah

            # midpoint IoU against the target boxes
            b1x1 = bx - 0.5 * bw
            b1x2 = bx + 0.5 * bw
            b1y1 = by - 0.5 * bh
            b1y2 = by + 0.5 * bh
            b2x1 = t1 - 0.5 * t3
            b2x2 = t1 + 0.5 * t3
            b2y1 = t2 - 0.5 * t4
            b2y2 = t2 + 0.5 * t4
            iw = jnp.maximum(jnp.minimum(b1x2, b2x2) - jnp.maximum(b1x1, b2x1), 0.0)
            ih = jnp.maximum(jnp.minimum(b1y2, b2y2) - jnp.maximum(b1y1, b2y1), 0.0)
            inter = iw * ih
            area1 = jnp.abs((b1x2 - b1x1) * (b1y2 - b1y1))
            area2 = jnp.abs((b2x2 - b2x1) * (b2y2 - b2y1))
            iou = inter / (area1 + area2 - inter + 1e-6)

            obj_bce = relu0 - p0 * iou + softplus0  # BCEWithLogits(p0, iou)

            # box-coordinate squared errors (anchor reciprocals -> multiplies)
            tw_log = jnp.log(t3 * inv_aw + 1e-16)
            th_log = jnp.log(t4 * inv_ah + 1e-16)
            sq = ((bx - t1) ** 2 + (by - t2) ** 2
                  + (p3 - tw_log) ** 2 + (p4 - th_log) ** 2)

            zero = jnp.zeros_like(p0)
            one = jnp.ones_like(p0)
            acc_nb = acc_nb + _fold_to_8(jnp.where(no_obj, noobj_bce, zero))
            acc_nc = acc_nc + _fold_to_8(jnp.where(no_obj, one, zero))
            acc_ob = acc_ob + _fold_to_8(jnp.where(obj, obj_bce, zero))
            acc_oc = acc_oc + _fold_to_8(jnp.where(obj, one, zero))
            acc_sq = acc_sq + _fold_to_8(jnp.where(obj, sq, zero))
            return (acc_nb, acc_nc, acc_ob, acc_oc, acc_sq)

        accs = tuple(jnp.zeros((8, LANES), jnp.float32) for _ in range(5))
        if nchunks <= 8:
            # small trip count: static Python unroll (full scheduler visibility)
            for c in range(nchunks):
                accs = chunk_body(c, accs)
        else:
            accs = jax.lax.fori_loop(0, nchunks, chunk_body, accs, unroll=2)

        # per-anchor output block is VMEM-resident across the inner (arbitrary) axis
        @pl.when(t == 0)
        def _init():
            out_ref[...] = jnp.zeros_like(out_ref)

        out_ref[0, 0] += accs[0]   # no-obj BCE sum
        out_ref[0, 1] += accs[1]   # no-obj count
        out_ref[0, 2] += accs[2]   # obj BCE sum
        out_ref[0, 3] += accs[3]   # obj count
        out_ref[0, 4] += accs[4]   # box squared-error sum

    return kernel


@partial(jax.jit, static_argnames=("storage_dtype",))
def yolo_loss_pallas(predictions, target, anchors, *, storage_dtype=jnp.float32):
    """YoloLoss forward.  storage_dtype=jnp.bfloat16 halves HBM traffic (math stays f32)."""
    B, A, S1, S2, C = predictions.shape
    M = B * S1 * S2                      # valid cells per anchor
    storage_dtype = jnp.dtype(storage_dtype)
    chunk = 8 if storage_dtype.itemsize >= 4 else 16

    mr = _cdiv(M, LANES)
    T = _cdiv(mr, R_MAX)
    R = _round_up(_cdiv(mr, T), SUBLANE_ROUND)   # rows per grid step (mult. of 16)
    mr_pad = R * T                               # all blocks full -> no partial-block reads
    pad_cells = mr_pad * LANES - M

    # glue: channel-major, anchor-major (A, 5, M) layout.
    # TODO(synk): produce this layout upstream to avoid the extra HBM copy pass.
    pred_cm = jnp.transpose(predictions[..., :5], (1, 4, 0, 2, 3)).reshape(A, 5, M)
    tgt_cm = jnp.transpose(target[..., :5], (1, 4, 0, 2, 3)).reshape(A, 5, M)
    pred_cm = pred_cm.astype(storage_dtype)
    tgt_cm = tgt_cm.astype(storage_dtype)
    if pad_cells:
        pred_cm = jnp.pad(pred_cm, ((0, 0), (0, 0), (0, pad_cells)))
        tgt_cm = jnp.pad(tgt_cm, ((0, 0), (0, 0), (0, pad_cells)))
    pred_b = pred_cm.reshape(A, 5, mr_pad, LANES)
    tgt_b = tgt_cm.reshape(A, 5, mr_pad, LANES)

    # tiny SMEM anchor table: [w, h, 1/w, 1/h] per anchor (reciprocals hoisted)
    a32 = anchors.astype(jnp.float32).reshape(A, 2)
    anch_table = jnp.concatenate([a32, 1.0 / a32], axis=1)      # (A, 4)

    kernel = _make_kernel(M=M, R=R, chunk=chunk)

    partials = pl.pallas_call(
        kernel,
        out_shape=jax.ShapeDtypeStruct((A, 5, 8, LANES), jnp.float32),
        grid_spec=pltpu.PrefetchScalarGridSpec(
            num_scalar_prefetch=1,
            grid=(A, T),
            in_specs=[
                pl.BlockSpec((1, 5, R, LANES), lambda a, t, anch: (a, 0, t, 0)),
                pl.BlockSpec((1, 5, R, LANES), lambda a, t, anch: (a, 0, t, 0)),
            ],
            out_specs=pl.BlockSpec((1, 5, 8, LANES), lambda a, t, anch: (a, 0, 0, 0)),
        ),
        compiler_params=pltpu.CompilerParams(
            dimension_semantics=("parallel", "arbitrary"),
            vmem_limit_bytes=32 * 1024 * 1024),
    )(anch_table, pred_b, tgt_b)

    # tiny finalize in plain JAX: cross-anchor/cross-lane reduce, divides, lambdas
    sums = jnp.sum(partials, axis=(0, 2, 3))                    # (5,)
    noobj_sum, noobj_cnt = sums[0], sums[1]
    obj_sum, obj_cnt = sums[2], sums[3]
    sq_sum = sums[4]
    no_object_loss = noobj_sum / noobj_cnt
    object_loss = obj_sum / obj_cnt
    box_loss = sq_sum / (4.0 * obj_cnt)
    return (LAMBDA_NO_OBJECT * no_object_loss
            + LAMBDA_OBJECT * object_loss
            + LAMBDA_BOX * box_loss)


def yolo_loss_ref(predictions, target, anchors):
    """Pure-JAX reference matching the PyTorch forward (masked means)."""
    def bce(x, z):
        return jnp.maximum(x, 0.0) - x * z + jnp.log1p(jnp.exp(-jnp.abs(x)))

    obj = target[..., 0] == 1.0
    no_obj = target[..., 0] == 0.0
    p0 = predictions[..., 0]
    t0 = target[..., 0]
    n_obj = jnp.sum(obj.astype(jnp.float32))
    n_noobj = jnp.sum(no_obj.astype(jnp.float32))

    no_object_loss = jnp.sum(jnp.where(no_obj, bce(p0, t0), 0.0)) / n_noobj

    anch = anchors.reshape(1, -1, 1, 1, 2)
    bx = jax.nn.sigmoid(predictions[..., 1])
    by = jax.nn.sigmoid(predictions[..., 2])
    bw = jnp.exp(predictions[..., 3]) * anch[..., 0]
    bh = jnp.exp(predictions[..., 4]) * anch[..., 1]
    tx, ty, tw, th = (target[..., 1], target[..., 2],
                      target[..., 3], target[..., 4])

    b1x1, b1x2 = bx - bw / 2, bx + bw / 2
    b1y1, b1y2 = by - bh / 2, by + bh / 2
    b2x1, b2x2 = tx - tw / 2, tx + tw / 2
    b2y1, b2y2 = ty - th / 2, ty + th / 2
    inter = (jnp.maximum(jnp.minimum(b1x2, b2x2) - jnp.maximum(b1x1, b2x1), 0.0)
             * jnp.maximum(jnp.minimum(b1y2, b2y2) - jnp.maximum(b1y1, b2y1), 0.0))
    area1 = jnp.abs((b1x2 - b1x1) * (b1y2 - b1y1))
    area2 = jnp.abs((b2x2 - b2x1) * (b2y2 - b2y1))
    iou = inter / (area1 + area2 - inter + 1e-6)

    object_loss = jnp.sum(jnp.where(obj, bce(p0, t0 * iou), 0.0)) / n_obj

    tw_log = jnp.log(tw / anch[..., 0] + 1e-16)
    th_log = jnp.log(th / anch[..., 1] + 1e-16)
    sq = ((bx - tx) ** 2 + (by - ty) ** 2
          + (predictions[..., 3] - tw_log) ** 2
          + (predictions[..., 4] - th_log) ** 2)
    box_loss = jnp.sum(jnp.where(obj, sq, 0.0)) / (4.0 * n_obj)

    return (LAMBDA_NO_OBJECT * no_object_loss
            + LAMBDA_OBJECT * object_loss
            + LAMBDA_BOX * box_loss)


def _make_inputs(key, B, A, S, C):
    kp, km, kxy, kwh = jax.random.split(key, 4)
    predictions = jax.random.normal(kp, (B, A, S, S, C), dtype=jnp.float32) * 0.5
    obj_mask = jax.random.bernoulli(km, 0.3, (B, A, S, S)).astype(jnp.float32)
    boxes_xy = jax.random.uniform(kxy, (B, A, S, S, 2), minval=0.05, maxval=0.95)
    boxes_wh = jax.random.uniform(kwh, (B, A, S, S, 2), minval=0.3, maxval=2.0)
    target = jnp.concatenate(
        [obj_mask[..., None], boxes_xy, boxes_wh,
         jnp.zeros((B, A, S, S, 1), jnp.float32)], axis=-1)
    return predictions, target


if __name__ == "__main__":
    key = jax.random.PRNGKey(0)
    anchors = jnp.array([[1.0, 1.0], [2.0, 1.5], [0.5, 0.8]], dtype=jnp.float32)
    k1, k2 = jax.random.split(key)

    # case 1: lane-aligned cell count (B*S*S = 512 cells per anchor), f32 storage
    preds1, tgt1 = _make_inputs(k1, 2, 3, 16, 6)
    loss1 = jax.block_until_ready(yolo_loss_pallas(preds1, tgt1, anchors))
    ref1 = jax.block_until_ready(yolo_loss_ref(preds1, tgt1, anchors))
    assert jnp.isfinite(loss1), "kernel produced a non-finite loss"
    assert jnp.allclose(loss1, ref1, rtol=1e-4, atol=1e-4), (loss1, ref1)

    # case 2: non-aligned cell count (S=13 -> 338 cells/anchor, exercises tail masking)
    preds2, tgt2 = _make_inputs(k2, 2, 3, 13, 6)
    loss2 = jax.block_until_ready(yolo_loss_pallas(preds2, tgt2, anchors))
    ref2 = jax.block_until_ready(yolo_loss_ref(preds2, tgt2, anchors))
    assert jnp.isfinite(loss2), "kernel produced a non-finite loss"
    assert jnp.allclose(loss2, ref2, rtol=1e-4, atol=1e-4), (loss2, ref2)

    # case 3: bf16 HBM storage (half the HBM bytes); compare against the reference
    # evaluated on the same bf16-quantized inputs (kernel math is f32 either way).
    loss3 = jax.block_until_ready(
        yolo_loss_pallas(preds1, tgt1, anchors, storage_dtype=jnp.bfloat16))
    preds1_q = preds1.astype(jnp.bfloat16).astype(jnp.float32)
    tgt1_q = tgt1.astype(jnp.bfloat16).astype(jnp.float32)
    ref3 = jax.block_until_ready(yolo_loss_ref(preds1_q, tgt1_q, anchors))
    assert jnp.isfinite(loss3), "kernel produced a non-finite loss"
    assert jnp.allclose(loss3, ref3, rtol=2e-3, atol=2e-3), (loss3, ref3)

    print("KERNEL_OK")
</pallas_src>

<mosaic_0001>
module attributes {stable_mosaic.version = 11 : i64} {
  func.func @kernel(%arg0: i32, %arg1: i32, %arg2: memref<3x4xf32, #tpu.memory_space<smem>>, %arg3: memref<1x5x16x128xf32, #tpu.memory_space<vmem>>, %arg4: memref<1x5x16x128xf32, #tpu.memory_space<vmem>>, %arg5: memref<1x5x8x128xf32, #tpu.memory_space<vmem>>) attributes {dimension_semantics = [#tpu.dimension_semantics<parallel>, #tpu.dimension_semantics<arbitrary>], iteration_bounds = array<i64: 3, 1>, scalar_prefetch = 1 : i64, scratch_operands = 0 : i64, tpu.core_type = #tpu.core_type<tc>, window_params = [{transform_indices = @transform_0, window_bounds = array<i64: 1, 5, 16, 128>}, {transform_indices = @transform_1, window_bounds = array<i64: 1, 5, 16, 128>}, {transform_indices = @transform_2, window_bounds = array<i64: 1, 5, 8, 128>}]} {
    %0 = arith.index_cast %arg0 : i32 to index
    %c0 = arith.constant 0 : index
    %1 = memref.load %arg2[%0, %c0] : memref<3x4xf32, #tpu.memory_space<smem>>
    %2 = arith.index_cast %arg0 : i32 to index
    %c1 = arith.constant 1 : index
    %3 = memref.load %arg2[%2, %c1] : memref<3x4xf32, #tpu.memory_space<smem>>
    %4 = arith.index_cast %arg0 : i32 to index
    %c2 = arith.constant 2 : index
    %5 = memref.load %arg2[%4, %c2] : memref<3x4xf32, #tpu.memory_space<smem>>
    %6 = arith.index_cast %arg0 : i32 to index
    %c3 = arith.constant 3 : index
    %7 = memref.load %arg2[%6, %c3] : memref<3x4xf32, #tpu.memory_space<smem>>
    %8 = tpu.iota {dimensions = array<i32: 0>} : vector<8x128xi32>
    %9 = tpu.iota {dimensions = array<i32: 1>} : vector<8x128xi32>
    %c128_i32 = arith.constant 128 : i32
    %10 = vector.broadcast %c128_i32 : i32 to vector<8x128xi32>
    %11 = arith.muli %8, %10 : vector<8x128xi32>
    %12 = arith.addi %11, %9 : vector<8x128xi32>
    %c2048_i32 = arith.constant 2048 : i32
    %13 = arith.muli %arg1, %c2048_i32 : i32
    %cst = arith.constant 0.000000e+00 : f32
    %14 = vector.broadcast %cst : f32 to vector<8x128xf32>
    %cst_0 = arith.constant 0.000000e+00 : f32
    %15 = vector.broadcast %cst_0 : f32 to vector<8x128xf32>
    %cst_1 = arith.constant 0.000000e+00 : f32
    %16 = vector.broadcast %cst_1 : f32 to vector<8x128xf32>
    %cst_2 = arith.constant 0.000000e+00 : f32
    %17 = vector.broadcast %cst_2 : f32 to vector<8x128xf32>
    %cst_3 = arith.constant 0.000000e+00 : f32
    %18 = vector.broadcast %cst_3 : f32 to vector<8x128xf32>
    %c0_4 = arith.constant 0 : index
    %c0_5 = arith.constant 0 : index
    %c0_6 = arith.constant 0 : index
    %c0_7 = arith.constant 0 : index
    %19 = vector.load %arg3[%c0_4, %c0_5, %c0_6, %c0_7] : memref<1x5x16x128xf32, #tpu.memory_space<vmem>>, vector<1x1x8x128xf32>
    %20 = vector.shape_cast %19 : vector<1x1x8x128xf32> to vector<8x128xf32>
    %c0_8 = arith.constant 0 : index
    %c1_9 = arith.constant 1 : index
    %c0_10 = arith.constant 0 : index
    %c0_11 = arith.constant 0 : index
    %21 = vector.load %arg3[%c0_8, %c1_9, %c0_10, %c0_11] : memref<1x5x16x128xf32, #tpu.memory_space<vmem>>, vector<1x1x8x128xf32>
    %22 = vector.shape_cast %21 : vector<1x1x8x128xf32> to vector<8x128xf32>
    %c0_12 = arith.constant 0 : index
    %c2_13 = arith.constant 2 : index
    %c0_14 = arith.constant 0 : index
    %c0_15 = arith.constant 0 : index
    %23 = vector.load %arg3[%c0_12, %c2_13, %c0_14, %c0_15] : memref<1x5x16x128xf32, #tpu.memory_space<vmem>>, vector<1x1x8x128xf32>
    %24 = vector.shape_cast %23 : vector<1x1x8x128xf32> to vector<8x128xf32>
    %c0_16 = arith.constant 0 : index
    %c3_17 = arith.constant 3 : index
    %c0_18 = arith.constant 0 : index
    %c0_19 = arith.constant 0 : index
    %25 = vector.load %arg3[%c0_16, %c3_17, %c0_18, %c0_19] : memref<1x5x16x128xf32, #tpu.memory_space<vmem>>, vector<1x1x8x128xf32>
    %26 = vector.shape_cast %25 : vector<1x1x8x128xf32> to vector<8x128xf32>
    %c0_20 = arith.constant 0 : index
    %c4 = arith.constant 4 : index
    %c0_21 = arith.constant 0 : index
    %c0_22 = arith.constant 0 : index
    %27 = vector.load %arg3[%c0_20, %c4, %c0_21, %c0_22] : memref<1x5x16x128xf32, #tpu.memory_space<vmem>>, vector<1x1x8x128xf32>
    %28 = vector.shape_cast %27 : vector<1x1x8x128xf32> to vector<8x128xf32>
    %c0_23 = arith.constant 0 : index
    %c0_24 = arith.constant 0 : index
    %c0_25 = arith.constant 0 : index
    %c0_26 = arith.constant 0 : index
    %29 = vector.load %arg4[%c0_23, %c0_24, %c0_25, %c0_26] : memref<1x5x16x128xf32, #tpu.memory_space<vmem>>, vector<1x1x8x128xf32>
    %30 = vector.shape_cast %29 : vector<1x1x8x128xf32> to vector<8x128xf32>
    %c0_27 = arith.constant 0 : index
    %c1_28 = arith.constant 1 : index
    %c0_29 = arith.constant 0 : index
    %c0_30 = arith.constant 0 : index
    %31 = vector.load %arg4[%c0_27, %c1_28, %c0_29, %c0_30] : memref<1x5x16x128xf32, #tpu.memory_space<vmem>>, vector<1x1x8x128xf32>
    %32 = vector.shape_cast %31 : vector<1x1x8x128xf32> to vector<8x128xf32>
    %c0_31 = arith.constant 0 : index
    %c2_32 = arith.constant 2 : index
    %c0_33 = arith.constant 0 : index
    %c0_34 = arith.constant 0 : index
    %33 = vector.load %arg4[%c0_31, %c2_32, %c0_33, %c0_34] : memref<1x5x16x128xf32, #tpu.memory_space<vmem>>, vector<1x1x8x128xf32>
    %34 = vector.shape_cast %33 : vector<1x1x8x128xf32> to vector<8x128xf32>
    %c0_35 = arith.constant 0 : index
    %c3_36 = arith.constant 3 : index
    %c0_37 = arith.constant 0 : index
    %c0_38 = arith.constant 0 : index
    %35 = vector.load %arg4[%c0_35, %c3_36, %c0_37, %c0_38] : memref<1x5x16x128xf32, #tpu.memory_space<vmem>>, vector<1x1x8x128xf32>
    %36 = vector.shape_cast %35 : vector<1x1x8x128xf32> to vector<8x128xf32>
    %c0_39 = arith.constant 0 : index
    %c4_40 = arith.constant 4 : index
    %c0_41 = arith.constant 0 : index
    %c0_42 = arith.constant 0 : index
    %37 = vector.load %arg4[%c0_39, %c4_40, %c0_41, %c0_42] : memref<1x5x16x128xf32, #tpu.memory_space<vmem>>, vector<1x1x8x128xf32>
    %38 = vector.shape_cast %37 : vector<1x1x8x128xf32> to vector<8x128xf32>
    %c0_i32 = arith.constant 0 : i32
    %39 = arith.addi %13, %c0_i32 : i32
    %40 = vector.broadcast %39 : i32 to vector<8x128xi32>
    %41 = arith.addi %40, %12 : vector<8x128xi32>
    %c512_i32 = arith.constant 512 : i32
    %42 = vector.broadcast %c512_i32 : i32 to vector<8x128xi32>
    %43 = arith.cmpi slt, %41, %42 : vector<8x128xi32>
    %cst_43 = arith.constant 1.000000e+00 : f32
    %44 = vector.broadcast %cst_43 : f32 to vector<8x128xf32>
    %45 = arith.cmpf oeq, %30, %44 : vector<8x128xf32>
    %46 = arith.andi %43, %45 : vector<8x128xi1>
    %cst_44 = arith.constant 0.000000e+00 : f32
    %47 = vector.broadcast %cst_44 : f32 to vector<8x128xf32>
    %48 = arith.cmpf oeq, %30, %47 : vector<8x128xf32>
    %49 = arith.andi %43, %48 : vector<8x128xi1>
    %cst_45 = arith.constant 0.000000e+00 : f32
    %50 = vector.broadcast %cst_45 : f32 to vector<8x128xf32>
    %51 = arith.maximumf %20, %50 : vector<8x128xf32>
    %52 = math.absf %20 : vector<8x128xf32>
    %cst_46 = arith.constant 0.000000e+00 : f32
    %53 = vector.broadcast %cst_46 : f32 to vector<8x128xf32>
    %54 = arith.subf %53, %52 : vector<8x128xf32>
    %55 = math.exp %54 : vector<8x128xf32>
    %56 = math.log1p %55 : vector<8x128xf32>
    %57 = arith.addf %51, %56 : vector<8x128xf32>
    %cst_47 = arith.constant 5.000000e-01 : f32
    %58 = vector.broadcast %cst_47 : f32 to vector<8x128xf32>
    %59 = arith.mulf %58, %22 : vector<8x128xf32>
    %60 = math.tanh %59 : vector<8x128xf32>
    %cst_48 = arith.constant 5.000000e-01 : f32
    %61 = vector.broadcast %cst_48 : f32 to vector<8x128xf32>
    %62 = arith.mulf %61, %60 : vector<8x128xf32>
    %cst_49 = arith.constant 5.000000e-01 : f32
    %63 = vector.broadcast %cst_49 : f32 to vector<8x128xf32>
    %64 = arith.addf %62, %63 : vector<8x128xf32>
    %cst_50 = arith.constant 5.000000e-01 : f32
    %65 = vector.broadcast %cst_50 : f32 to vector<8x128xf32>
    %66 = arith.mulf %65, %24 : vector<8x128xf32>
    %67 = math.tanh %66 : vector<8x128xf32>
    %cst_51 = arith.constant 5.000000e-01 : f32
    %68 = vector.broadcast %cst_51 : f32 to vector<8x128xf32>
    %69 = arith.mulf %68, %67 : vector<8x128xf32>
    %cst_52 = arith.constant 5.000000e-01 : f32
    %70 = vector.broadcast %cst_52 : f32 to vector<8x128xf32>
    %71 = arith.addf %69, %70 : vector<8x128xf32>
    %72 = math.exp %26 : vector<8x128xf32>
    %73 = vector.broadcast %1 : f32 to vector<8x128xf32>
    %74 = arith.mulf %72, %73 : vector<8x128xf32>
    %75 = math.exp %28 : vector<8x128xf32>
    %76 = vector.broadcast %3 : f32 to vector<8x128xf32>
    %77 = arith.mulf %75, %76 : vector<8x128xf32>
    %cst_53 = arith.constant 5.000000e-01 : f32
    %78 = vector.broadcast %cst_53 : f32 to vector<8x128xf32>
    %79 = arith.mulf %78, %74 : vector<8x128xf32>
    %80 = arith.subf %64, %79 : vector<8x128xf32>
    %cst_54 = arith.constant 5.000000e-01 : f32
    %81 = vector.broadcast %cst_54 : f32 to vector<8x128xf32>
    %82 = arith.mulf %81, %74 : vector<8x128xf32>
    %83 = arith.addf %64, %82 : vector<8x128xf32>
    %cst_55 = arith.constant 5.000000e-01 : f32
    %84 = vector.broadcast %cst_55 : f32 to vector<8x128xf32>
    %85 = arith.mulf %84, %77 : vector<8x128xf32>
    %86 = arith.subf %71, %85 : vector<8x128xf32>
    %cst_56 = arith.constant 5.000000e-01 : f32
    %87 = vector.broadcast %cst_56 : f32 to vector<8x128xf32>
    %88 = arith.mulf %87, %77 : vector<8x128xf32>
    %89 = arith.addf %71, %88 : vector<8x128xf32>
    %cst_57 = arith.constant 5.000000e-01 : f32
    %90 = vector.broadcast %cst_57 : f32 to vector<8x128xf32>
    %91 = arith.mulf %90, %36 : vector<8x128xf32>
    %92 = arith.subf %32, %91 : vector<8x128xf32>
    %cst_58 = arith.constant 5.000000e-01 : f32
    %93 = vector.broadcast %cst_58 : f32 to vector<8x128xf32>
    %94 = arith.mulf %93, %36 : vector<8x128xf32>
    %95 = arith.addf %32, %94 : vector<8x128xf32>
    %cst_59 = arith.constant 5.000000e-01 : f32
    %96 = vector.broadcast %cst_59 : f32 to vector<8x128xf32>
    %97 = arith.mulf %96, %38 : vector<8x128xf32>
    %98 = arith.subf %34, %97 : vector<8x128xf32>
    %cst_60 = arith.constant 5.000000e-01 : f32
    %99 = vector.broadcast %cst_60 : f32 to vector<8x128xf32>
    %100 = arith.mulf %99, %38 : vector<8x128xf32>
    %101 = arith.addf %34, %100 : vector<8x128xf32>
    %102 = arith.minimumf %83, %95 : vector<8x128xf32>
    %103 = arith.maximumf %80, %92 : vector<8x128xf32>
    %104 = arith.subf %102, %103 : vector<8x128xf32>
    %cst_61 = arith.constant 0.000000e+00 : f32
    %105 = vector.broadcast %cst_61 : f32 to vector<8x128xf32>
    %106 = arith.maximumf %104, %105 : vector<8x128xf32>
    %107 = arith.minimumf %89, %101 : vector<8x128xf32>
    %108 = arith.maximumf %86, %98 : vector<8x128xf32>
    %109 = arith.subf %107, %108 : vector<8x128xf32>
    %cst_62 = arith.constant 0.000000e+00 : f32
    %110 = vector.broadcast %cst_62 : f32 to vector<8x128xf32>
    %111 = arith.maximumf %109, %110 : vector<8x128xf32>
    %112 = arith.mulf %106, %111 : vector<8x128xf32>
    %113 = arith.subf %83, %80 : vector<8x128xf32>
    %114 = arith.subf %89, %86 : vector<8x128xf32>
    %115 = arith.mulf %113, %114 : vector<8x128xf32>
    %116 = math.absf %115 : vector<8x128xf32>
    %117 = arith.subf %95, %92 : vector<8x128xf32>
    %118 = arith.subf %101, %98 : vector<8x128xf32>
    %119 = arith.mulf %117, %118 : vector<8x128xf32>
    %120 = math.absf %119 : vector<8x128xf32>
    %121 = arith.addf %116, %120 : vector<8x128xf32>
    %122 = arith.subf %121, %112 : vector<8x128xf32>
    %cst_63 = arith.constant 9.99999997E-7 : f32
    %123 = vector.broadcast %cst_63 : f32 to vector<8x128xf32>
    %124 = arith.addf %122, %123 : vector<8x128xf32>
    %125 = arith.divf %112, %124 : vector<8x128xf32>
    %126 = arith.mulf %20, %125 : vector<8x128xf32>
    %127 = arith.subf %51, %126 : vector<8x128xf32>
    %128 = arith.addf %127, %56 : vector<8x128xf32>
    %129 = vector.broadcast %5 : f32 to vector<8x128xf32>
    %130 = arith.mulf %36, %129 : vector<8x128xf32>
    %cst_64 = arith.constant 1.000000e-16 : f32
    %131 = vector.broadcast %cst_64 : f32 to vector<8x128xf32>
    %132 = arith.addf %130, %131 : vector<8x128xf32>
    %133 = math.log %132 : vector<8x128xf32>
    %134 = vector.broadcast %7 : f32 to vector<8x128xf32>
    %135 = arith.mulf %38, %134 : vector<8x128xf32>
    %cst_65 = arith.constant 1.000000e-16 : f32
    %136 = vector.broadcast %cst_65 : f32 to vector<8x128xf32>
    %137 = arith.addf %135, %136 : vector<8x128xf32>
    %138 = math.log %137 : vector<8x128xf32>
    %139 = arith.subf %64, %32 : vector<8x128xf32>
    %140 = arith.mulf %139, %139 : vector<8x128xf32>
    %141 = arith.subf %71, %34 : vector<8x128xf32>
    %142 = arith.mulf %141, %141 : vector<8x128xf32>
    %143 = arith.addf %140, %142 : vector<8x128xf32>
    %144 = arith.subf %26, %133 : vector<8x128xf32>
    %145 = arith.mulf %144, %144 : vector<8x128xf32>
    %146 = arith.addf %143, %145 : vector<8x128xf32>
    %147 = arith.subf %28, %138 : vector<8x128xf32>
    %148 = arith.mulf %147, %147 : vector<8x128xf32>
    %149 = arith.addf %146, %148 : vector<8x128xf32>
    %cst_66 = arith.constant 0.000000e+00 : f32
    %150 = vector.broadcast %cst_66 : f32 to vector<8x128xf32>
    %cst_67 = arith.constant 1.000000e+00 : f32
    %151 = vector.broadcast %cst_67 : f32 to vector<8x128xf32>
    %152 = arith.select %49, %57, %150 : vector<8x128xi1>, vector<8x128xf32>
    %153 = arith.addf %14, %152 : vector<8x128xf32>
    %154 = arith.select %49, %151, %150 : vector<8x128xi1>, vector<8x128xf32>
    %155 = arith.addf %15, %154 : vector<8x128xf32>
    %156 = arith.select %46, %128, %150 : vector<8x128xi1>, vector<8x128xf32>
    %157 = arith.addf %16, %156 : vector<8x128xf32>
    %158 = arith.select %46, %151, %150 : vector<8x128xi1>, vector<8x128xf32>
    %159 = arith.addf %17, %158 : vector<8x128xf32>
    %160 = arith.select %46, %149, %150 : vector<8x128xi1>, vector<8x128xf32>
    %161 = arith.addf %18, %160 : vector<8x128xf32>
    %c0_68 = arith.constant 0 : index
    %c0_69 = arith.constant 0 : index
    %c8 = arith.constant 8 : index
    %c0_70 = arith.constant 0 : index
    %162 = vector.load %arg3[%c0_68, %c0_69, %c8, %c0_70] : memref<1x5x16x128xf32, #tpu.memory_space<vmem>>, vector<1x1x8x128xf32>
    %163 = vector.shape_cast %162 : vector<1x1x8x128xf32> to vector<8x128xf32>
    %c0_71 = arith.constant 0 : index
    %c1_72 = arith.constant 1 : index
    %c8_73 = arith.constant 8 : index
    %c0_74 = arith.constant 0 : index
    %164 = vector.load %arg3[%c0_71, %c1_72, %c8_73, %c0_74] : memref<1x5x16x128xf32, #tpu.memory_space<vmem>>, vector<1x1x8x128xf32>
    %165 = vector.shape_cast %164 : vector<1x1x8x128xf32> to vector<8x128xf32>
    %c0_75 = arith.constant 0 : index
    %c2_76 = arith.constant 2 : index
    %c8_77 = arith.constant 8 : index
    %c0_78 = arith.constant 0 : index
    %166 = vector.load %arg3[%c0_75, %c2_76, %c8_77, %c0_78] : memref<1x5x16x128xf32, #tpu.memory_space<vmem>>, vector<1x1x8x128xf32>
    %167 = vector.shape_cast %166 : vector<1x1x8x128xf32> to vector<8x128xf32>
    %c0_79 = arith.constant 0 : index
    %c3_80 = arith.constant 3 : index
    %c8_81 = arith.constant 8 : index
    %c0_82 = arith.constant 0 : index
    %168 = vector.load %arg3[%c0_79, %c3_80, %c8_81, %c0_82] : memref<1x5x16x128xf32, #tpu.memory_space<vmem>>, vector<1x1x8x128xf32>
    %169 = vector.shape_cast %168 : vector<1x1x8x128xf32> to vector<8x128xf32>
    %c0_83 = arith.constant 0 : index
    %c4_84 = arith.constant 4 : index
    %c8_85 = arith.constant 8 : index
    %c0_86 = arith.constant 0 : index
    %170 = vector.load %arg3[%c0_83, %c4_84, %c8_85, %c0_86] : memref<1x5x16x128xf32, #tpu.memory_space<vmem>>, vector<1x1x8x128xf32>
    %171 = vector.shape_cast %170 : vector<1x1x8x128xf32> to vector<8x128xf32>
    %c0_87 = arith.constant 0 : index
    %c0_88 = arith.constant 0 : index
    %c8_89 = arith.constant 8 : index
    %c0_90 = arith.constant 0 : index
    %172 = vector.load %arg4[%c0_87, %c0_88, %c8_89, %c0_90] : memref<1x5x16x128xf32, #tpu.memory_space<vmem>>, vector<1x1x8x128xf32>
    %173 = vector.shape_cast %172 : vector<1x1x8x128xf32> to vector<8x128xf32>
    %c0_91 = arith.constant 0 : index
    %c1_92 = arith.constant 1 : index
    %c8_93 = arith.constant 8 : index
    %c0_94 = arith.constant 0 : index
    %174 = vector.load %arg4[%c0_91, %c1_92, %c8_93, %c0_94] : memref<1x5x16x128xf32, #tpu.memory_space<vmem>>, vector<1x1x8x128xf32>
    %175 = vector.shape_cast %174 : vector<1x1x8x128xf32> to vector<8x128xf32>
    %c0_95 = arith.constant 0 : index
    %c2_96 = arith.constant 2 : index
    %c8_97 = arith.constant 8 : index
    %c0_98 = arith.constant 0 : index
    %176 = vector.load %arg4[%c0_95, %c2_96, %c8_97, %c0_98] : memref<1x5x16x128xf32, #tpu.memory_space<vmem>>, vector<1x1x8x128xf32>
    %177 = vector.shape_cast %176 : vector<1x1x8x128xf32> to vector<8x128xf32>
    %c0_99 = arith.constant 0 : index
    %c3_100 = arith.constant 3 : index
    %c8_101 = arith.constant 8 : index
    %c0_102 = arith.constant 0 : index
    %178 = vector.load %arg4[%c0_99, %c3_100, %c8_101, %c0_102] : memref<1x5x16x128xf32, #tpu.memory_space<vmem>>, vector<1x1x8x128xf32>
    %179 = vector.shape_cast %178 : vector<1x1x8x128xf32> to vector<8x128xf32>
    %c0_103 = arith.constant 0 : index
    %c4_104 = arith.constant 4 : index
    %c8_105 = arith.constant 8 : index
    %c0_106 = arith.constant 0 : index
    %180 = vector.load %arg4[%c0_103, %c4_104, %c8_105, %c0_106] : memref<1x5x16x128xf32, #tpu.memory_space<vmem>>, vector<1x1x8x128xf32>
    %181 = vector.shape_cast %180 : vector<1x1x8x128xf32> to vector<8x128xf32>
    %c1024_i32 = arith.constant 1024 : i32
    %182 = arith.addi %13, %c1024_i32 : i32
    %183 = vector.broadcast %182 : i32 to vector<8x128xi32>
    %184 = arith.addi %183, %12 : vector<8x128xi32>
    %c512_i32_107 = arith.constant 512 : i32
    %185 = vector.broadcast %c512_i32_107 : i32 to vector<8x128xi32>
    %186 = arith.cmpi slt, %184, %185 : vector<8x128xi32>
    %cst_108 = arith.constant 1.000000e+00 : f32
    %187 = vector.broadcast %cst_108 : f32 to vector<8x128xf32>
    %188 = arith.cmpf oeq, %173, %187 : vector<8x128xf32>
    %189 = arith.andi %186, %188 : vector<8x128xi1>
    %cst_109 = arith.constant 0.000000e+00 : f32
    %190 = vector.broadcast %cst_109 : f32 to vector<8x128xf32>
    %191 = arith.cmpf oeq, %173, %190 : vector<8x128xf32>
    %192 = arith.andi %186, %191 : vector<8x128xi1>
    %cst_110 = arith.constant 0.000000e+00 : f32
    %193 = vector.broadcast %cst_110 : f32 to vector<8x128xf32>
    %194 = arith.maximumf %163, %193 : vector<8x128xf32>
    %195 = math.absf %163 : vector<8x128xf32>
    %cst_111 = arith.constant 0.000000e+00 : f32
    %196 = vector.broadcast %cst_111 : f32 to vector<8x128xf32>
    %197 = arith.subf %196, %195 : vector<8x128xf32>
    %198 = math.exp %197 : vector<8x128xf32>
    %199 = math.log1p %198 : vector<8x128xf32>
    %200 = arith.addf %194, %199 : vector<8x128xf32>
    %cst_112 = arith.constant 5.000000e-01 : f32
    %201 = vector.broadcast %cst_112 : f32 to vector<8x128xf32>
    %202 = arith.mulf %201, %165 : vector<8x128xf32>
    %203 = math.tanh %202 : vector<8x128xf32>
    %cst_113 = arith.constant 5.000000e-01 : f32
    %204 = vector.broadcast %cst_113 : f32 to vector<8x128xf32>
    %205 = arith.mulf %204, %203 : vector<8x128xf32>
    %cst_114 = arith.constant 5.000000e-01 : f32
    %206 = vector.broadcast %cst_114 : f32 to vector<8x128xf32>
    %207 = arith.addf %205, %206 : vector<8x128xf32>
    %cst_115 = arith.constant 5.000000e-01 : f32
    %208 = vector.broadcast %cst_115 : f32 to vector<8x128xf32>
    %209 = arith.mulf %208, %167 : vector<8x128xf32>
    %210 = math.tanh %209 : vector<8x128xf32>
    %cst_116 = arith.constant 5.000000e-01 : f32
    %211 = vector.broadcast %cst_116 : f32 to vector<8x128xf32>
    %212 = arith.mulf %211, %210 : vector<8x128xf32>
    %cst_117 = arith.constant 5.000000e-01 : f32
    %213 = vector.broadcast %cst_117 : f32 to vector<8x128xf32>
    %214 = arith.addf %212, %213 : vector<8x128xf32>
    %215 = math.exp %169 : vector<8x128xf32>
    %216 = vector.broadcast %1 : f32 to vector<8x128xf32>
    %217 = arith.mulf %215, %216 : vector<8x128xf32>
    %218 = math.exp %171 : vector<8x128xf32>
    %219 = vector.broadcast %3 : f32 to vector<8x128xf32>
    %220 = arith.mulf %218, %219 : vector<8x128xf32>
    %cst_118 = arith.constant 5.000000e-01 : f32
    %221 = vector.broadcast %cst_118 : f32 to vector<8x128xf32>
    %222 = arith.mulf %221, %217 : vector<8x128xf32>
    %223 = arith.subf %207, %222 : vector<8x128xf32>
    %cst_119 = arith.constant 5.000000e-01 : f32
    %224 = vector.broadcast %cst_119 : f32 to vector<8x128xf32>
    %225 = arith.mulf %224, %217 : vector<8x128xf32>
    %226 = arith.addf %207, %225 : vector<8x128xf32>
    %cst_120 = arith.constant 5.000000e-01 : f32
    %227 = vector.broadcast %cst_120 : f32 to vector<8x128xf32>
    %228 = arith.mulf %227, %220 : vector<8x128xf32>
    %229 = arith.subf %214, %228 : vector<8x128xf32>
    %cst_121 = arith.constant 5.000000e-01 : f32
    %230 = vector.broadcast %cst_121 : f32 to vector<8x128xf32>
    %231 = arith.mulf %230, %220 : vector<8x128xf32>
    %232 = arith.addf %214, %231 : vector<8x128xf32>
    %cst_122 = arith.constant 5.000000e-01 : f32
    %233 = vector.broadcast %cst_122 : f32 to vector<8x128xf32>
    %234 = arith.mulf %233, %179 : vector<8x128xf32>
    %235 = arith.subf %175, %234 : vector<8x128xf32>
    %cst_123 = arith.constant 5.000000e-01 : f32
    %236 = vector.broadcast %cst_123 : f32 to vector<8x128xf32>
    %237 = arith.mulf %236, %179 : vector<8x128xf32>
    %238 = arith.addf %175, %237 : vector<8x128xf32>
    %cst_124 = arith.constant 5.000000e-01 : f32
    %239 = vector.broadcast %cst_124 : f32 to vector<8x128xf32>
    %240 = arith.mulf %239, %181 : vector<8x128xf32>
    %241 = arith.subf %177, %240 : vector<8x128xf32>
    %cst_125 = arith.constant 5.000000e-01 : f32
    %242 = vector.broadcast %cst_125 : f32 to vector<8x128xf32>
    %243 = arith.mulf %242, %181 : vector<8x128xf32>
    %244 = arith.addf %177, %243 : vector<8x128xf32>
    %245 = arith.minimumf %226, %238 : vector<8x128xf32>
    %246 = arith.maximumf %223, %235 : vector<8x128xf32>
    %247 = arith.subf %245, %246 : vector<8x128xf32>
    %cst_126 = arith.constant 0.000000e+00 : f32
    %248 = vector.broadcast %cst_126 : f32 to vector<8x128xf32>
    %249 = arith.maximumf %247, %248 : vector<8x128xf32>
    %250 = arith.minimumf %232, %244 : vector<8x128xf32>
    %251 = arith.maximumf %229, %241 : vector<8x128xf32>
    %252 = arith.subf %250, %251 : vector<8x128xf32>
    %cst_127 = arith.constant 0.000000e+00 : f32
    %253 = vector.broadcast %cst_127 : f32 to vector<8x128xf32>
    %254 = arith.maximumf %252, %253 : vector<8x128xf32>
    %255 = arith.mulf %249, %254 : vector<8x128xf32>
    %256 = arith.subf %226, %223 : vector<8x128xf32>
    %257 = arith.subf %232, %229 : vector<8x128xf32>
    %258 = arith.mulf %256, %257 : vector<8x128xf32>
    %259 = math.absf %258 : vector<8x128xf32>
    %260 = arith.subf %238, %235 : vector<8x128xf32>
    %261 = arith.subf %244, %241 : vector<8x128xf32>
    %262 = arith.mulf %260, %261 : vector<8x128xf32>
    %263 = math.absf %262 : vector<8x128xf32>
    %264 = arith.addf %259, %263 : vector<8x128xf32>
    %265 = arith.subf %264, %255 : vector<8x128xf32>
    %cst_128 = arith.constant 9.99999997E-7 : f32
    %266 = vector.broadcast %cst_128 : f32 to vector<8x128xf32>
    %267 = arith.addf %265, %266 : vector<8x128xf32>
    %268 = arith.divf %255, %267 : vector<8x128xf32>
    %269 = arith.mulf %163, %268 : vector<8x128xf32>
    %270 = arith.subf %194, %269 : vector<8x128xf32>
    %271 = arith.addf %270, %199 : vector<8x128xf32>
    %272 = vector.broadcast %5 : f32 to vector<8x128xf32>
    %273 = arith.mulf %179, %272 : vector<8x128xf32>
    %cst_129 = arith.constant 1.000000e-16 : f32
    %274 = vector.broadcast %cst_129 : f32 to vector<8x128xf32>
    %275 = arith.addf %273, %274 : vector<8x128xf32>
    %276 = math.log %275 : vector<8x128xf32>
    %277 = vector.broadcast %7 : f32 to vector<8x128xf32>
    %278 = arith.mulf %181, %277 : vector<8x128xf32>
    %cst_130 = arith.constant 1.000000e-16 : f32
    %279 = vector.broadcast %cst_130 : f32 to vector<8x128xf32>
    %280 = arith.addf %278, %279 : vector<8x128xf32>
    %281 = math.log %280 : vector<8x128xf32>
    %282 = arith.subf %207, %175 : vector<8x128xf32>
    %283 = arith.mulf %282, %282 : vector<8x128xf32>
    %284 = arith.subf %214, %177 : vector<8x128xf32>
    %285 = arith.mulf %284, %284 : vector<8x128xf32>
    %286 = arith.addf %283, %285 : vector<8x128xf32>
    %287 = arith.subf %169, %276 : vector<8x128xf32>
    %288 = arith.mulf %287, %287 : vector<8x128xf32>
    %289 = arith.addf %286, %288 : vector<8x128xf32>
    %290 = arith.subf %171, %281 : vector<8x128xf32>
    %291 = arith.mulf %290, %290 : vector<8x128xf32>
    %292 = arith.addf %289, %291 : vector<8x128xf32>
    %cst_131 = arith.constant 0.000000e+00 : f32
    %293 = vector.broadcast %cst_131 : f32 to vector<8x128xf32>
    %cst_132 = arith.constant 1.000000e+00 : f32
    %294 = vector.broadcast %cst_132 : f32 to vector<8x128xf32>
    %295 = arith.select %192, %200, %293 : vector<8x128xi1>, vector<8x128xf32>
    %296 = arith.addf %153, %295 : vector<8x128xf32>
    %297 = arith.select %192, %294, %293 : vector<8x128xi1>, vector<8x128xf32>
    %298 = arith.addf %155, %297 : vector<8x128xf32>
    %299 = arith.select %189, %271, %293 : vector<8x128xi1>, vector<8x128xf32>
    %300 = arith.addf %157, %299 : vector<8x128xf32>
    %301 = arith.select %189, %294, %293 : vector<8x128xi1>, vector<8x128xf32>
    %302 = arith.addf %159, %301 : vector<8x128xf32>
    %303 = arith.select %189, %292, %293 : vector<8x128xi1>, vector<8x128xf32>
    %304 = arith.addf %161, %303 : vector<8x128xf32>
    %c0_i32_133 = arith.constant 0 : i32
    %305 = arith.cmpi eq, %arg1, %c0_i32_133 : i32
    %306 = arith.extui %305 : i1 to i32
    %c0_i32_134 = arith.constant 0 : i32
    %307 = arith.cmpi ne, %306, %c0_i32_134 : i32
    scf.if %307 {
      %cst_175 = arith.constant 0.000000e+00 : f32
      %338 = vector.broadcast %cst_175 : f32 to vector<1x5x8x128xf32>
      %c0_176 = arith.constant 0 : index
      %c0_177 = arith.constant 0 : index
      %c0_178 = arith.constant 0 : index
      %c0_179 = arith.constant 0 : index
      %339 = vector.load %arg5[%c0_176, %c0_177, %c0_178, %c0_179] : memref<1x5x8x128xf32, #tpu.memory_space<vmem>>, vector<1x5x8x128xf32>
      tpu.vector_store %arg5[%c0_176, %c0_177, %c0_178, %c0_179], %338 {strides = array<i32>} : memref<1x5x8x128xf32, #tpu.memory_space<vmem>>, vector<1x5x8x128xf32>,
    } else {
    }
    %c0_135 = arith.constant 0 : index
    %c0_136 = arith.constant 0 : index
    %c0_137 = arith.constant 0 : index
    %c0_138 = arith.constant 0 : index
    %308 = vector.load %arg5[%c0_135, %c0_136, %c0_137, %c0_138] : memref<1x5x8x128xf32, #tpu.memory_space<vmem>>, vector<1x1x8x128xf32>
    %309 = vector.shape_cast %308 : vector<1x1x8x128xf32> to vector<8x128xf32>
    %310 = arith.addf %309, %296 : vector<8x128xf32>
    %c0_139 = arith.constant 0 : index
    %c0_140 = arith.constant 0 : index
    %c0_141 = arith.constant 0 : index
    %c0_142 = arith.constant 0 : index
    %311 = vector.load %arg5[%c0_139, %c0_140, %c0_141, %c0_142] : memref<1x5x8x128xf32, #tpu.memory_space<vmem>>, vector<1x1x8x128xf32>
    %312 = vector.shape_cast %311 : vector<1x1x8x128xf32> to vector<8x128xf32>
    %313 = vector.shape_cast %310 : vector<8x128xf32> to vector<1x1x8x128xf32>
    tpu.vector_store %arg5[%c0_139, %c0_140, %c0_141, %c0_142], %313 {strides = array<i32>} : memref<1x5x8x128xf32, #tpu.memory_space<vmem>>, vector<1x1x8x128xf32>,
    %c0_143 = arith.constant 0 : index
    %c1_144 = arith.constant 1 : index
    %c0_145 = arith.constant 0 : index
    %c0_146 = arith.constant 0 : index
    %314 = vector.load %arg5[%c0_143, %c1_144, %c0_145, %c0_146] : memref<1x5x8x128xf32, #tpu.memory_space<vmem>>, vector<1x1x8x128xf32>
    %315 = vector.shape_cast %314 : vector<1x1x8x128xf32> to vector<8x128xf32>
    %316 = arith.addf %315, %298 : vector<8x128xf32>
    %c0_147 = arith.constant 0 : index
    %c1_148 = arith.constant 1 : index
    %c0_149 = arith.constant 0 : index
    %c0_150 = arith.constant 0 : index
    %317 = vector.load %arg5[%c0_147, %c1_148, %c0_149, %c0_150] : memref<1x5x8x128xf32, #tpu.memory_space<vmem>>, vector<1x1x8x128xf32>
    %318 = vector.shape_cast %317 : vector<1x1x8x128xf32> to vector<8x128xf32>
    %319 = vector.shape_cast %316 : vector<8x128xf32> to vector<1x1x8x128xf32>
    tpu.vector_store %arg5[%c0_147, %c1_148, %c0_149, %c0_150], %319 {strides = array<i32>} : memref<1x5x8x128xf32, #tpu.memory_space<vmem>>, vector<1x1x8x128xf32>,
    %c0_151 = arith.constant 0 : index
    %c2_152 = arith.constant 2 : index
    %c0_153 = arith.constant 0 : index
    %c0_154 = arith.constant 0 : index
    %320 = vector.load %arg5[%c0_151, %c2_152, %c0_153, %c0_154] : memref<1x5x8x128xf32, #tpu.memory_space<vmem>>, vector<1x1x8x128xf32>
    %321 = vector.shape_cast %320 : vector<1x1x8x128xf32> to vector<8x128xf32>
    %322 = arith.addf %321, %300 : vector<8x128xf32>
    %c0_155 = arith.constant 0 : index
    %c2_156 = arith.constant 2 : index
    %c0_157 = arith.constant 0 : index
    %c0_158 = arith.constant 0 : index
    %323 = vector.load %arg5[%c0_155, %c2_156, %c0_157, %c0_158] : memref<1x5x8x128xf32, #tpu.memory_space<vmem>>, vector<1x1x8x128xf32>
    %324 = vector.shape_cast %323 : vector<1x1x8x128xf32> to vector<8x128xf32>
    %325 = vector.shape_cast %322 : vector<8x128xf32> to vector<1x1x8x128xf32>
    tpu.vector_store %arg5[%c0_155, %c2_156, %c0_157, %c0_158], %325 {strides = array<i32>} : memref<1x5x8x128xf32, #tpu.memory_space<vmem>>, vector<1x1x8x128xf32>,
    %c0_159 = arith.constant 0 : index
    %c3_160 = arith.constant 3 : index
    %c0_161 = arith.constant 0 : index
    %c0_162 = arith.constant 0 : index
    %326 = vector.load %arg5[%c0_159, %c3_160, %c0_161, %c0_162] : memref<1x5x8x128xf32, #tpu.memory_space<vmem>>, vector<1x1x8x128xf32>
    %327 = vector.shape_cast %326 : vector<1x1x8x128xf32> to vector<8x128xf32>
    %328 = arith.addf %327, %302 : vector<8x128xf32>
    %c0_163 = arith.constant 0 : index
    %c3_164 = arith.constant 3 : index
    %c0_165 = arith.constant 0 : index
    %c0_166 = arith.constant 0 : index
    %329 = vector.load %arg5[%c0_163, %c3_164, %c0_165, %c0_166] : memref<1x5x8x128xf32, #tpu.memory_space<vmem>>, vector<1x1x8x128xf32>
    %330 = vector.shape_cast %329 : vector<1x1x8x128xf32> to vector<8x128xf32>
    %331 = vector.shape_cast %328 : vector<8x128xf32> to vector<1x1x8x128xf32>
    tpu.vector_store %arg5[%c0_163, %c3_164, %c0_165, %c0_166], %331 {strides = array<i32>} : memref<1x5x8x128xf32, #tpu.memory_space<vmem>>, vector<1x1x8x128xf32>,
    %c0_167 = arith.constant 0 : index
    %c4_168 = arith.constant 4 : index
    %c0_169 = arith.constant 0 : index
    %c0_170 = arith.constant 0 : index
    %332 = vector.load %arg5[%c0_167, %c4_168, %c0_169, %c0_170] : memref<1x5x8x128xf32, #tpu.memory_space<vmem>>, vector<1x1x8x128xf32>
    %333 = vector.shape_cast %332 : vector<1x1x8x128xf32> to vector<8x128xf32>
    %334 = arith.addf %333, %304 : vector<8x128xf32>
    %c0_171 = arith.constant 0 : index
    %c4_172 = arith.constant 4 : index
    %c0_173 = arith.constant 0 : index
    %c0_174 = arith.constant 0 : index
    %335 = vector.load %arg5[%c0_171, %c4_172, %c0_173, %c0_174] : memref<1x5x8x128xf32, #tpu.memory_space<vmem>>, vector<1x1x8x128xf32>
    %336 = vector.shape_cast %335 : vector<1x1x8x128xf32> to vector<8x128xf32>
    %337 = vector.shape_cast %334 : vector<8x128xf32> to vector<1x1x8x128xf32>
    tpu.vector_store %arg5[%c0_171, %c4_172, %c0_173, %c0_174], %337 {strides = array<i32>} : memref<1x5x8x128xf32, #tpu.memory_space<vmem>>, vector<1x1x8x128xf32>,
    return
  }
  func.func @transform_0(%arg0: i32, %arg1: i32, %arg2: memref<3x4xf32, #tpu.memory_space<smem>>) -> (i32, i32, i32, i32) {
    %c0_i32 = arith.constant 0 : i32
    %c0_i32_0 = arith.constant 0 : i32
    %c0_i32_1 = arith.constant 0 : i32
    return %arg0, %c0_i32, %arg1, %c0_i32_0 : i32, i32, i32, i32
  }
  func.func @transform_1(%arg0: i32, %arg1: i32, %arg2: memref<3x4xf32, #tpu.memory_space<smem>>) -> (i32, i32, i32, i32) {
    %c0_i32 = arith.constant 0 : i32
    %c0_i32_0 = arith.constant 0 : i32
    %c0_i32_1 = arith.constant 0 : i32
    return %arg0, %c0_i32, %arg1, %c0_i32_0 : i32, i32, i32, i32
  }
  func.func @transform_2(%arg0: i32, %arg1: i32, %arg2: memref<3x4xf32, #tpu.memory_space<smem>>) -> (i32, i32, i32, i32) {
    %c0_i32 = arith.constant 0 : i32
    %c0_i32_0 = arith.constant 0 : i32
    %c0_i32_1 = arith.constant 0 : i32
    %c0_i32_2 = arith.constant 0 : i32
    return %arg0, %c0_i32, %c0_i32_0, %c0_i32_1 : i32, i32, i32, i32
  }
}

</mosaic_0001>

<bundles_post_ra>
// kernel: yolo_loss_pallas.1
= control target key start
LH: loop header
LB: loop body
LE: loop exit
PB: predicated region body
PF: predicated region fallthrough
CT: control target
= control target key end

     0   :  { %s1037_s0 = inlined_call_operand.vmem [shape: f32[3,4], index: 0, kind: input, shape index: {}]   ;;  %s1038_s1 = inlined_call_operand.vmem [shape: f32[3,5,16,128], index: 1, kind: input, shape index: {}]   ;;  %s1039_s2 = inlined_call_operand.vmem [shape: f32[3,5,16,128], index: 2, kind: input, shape index: {}]   ;;  %s1040_s3 = inlined_call_operand.vmem [shape: f32[3,5,8,128], index: 3, kind: output, shape index: {}]  }
   0x1   :  { %s8_s14 = sshll.u32 %s1037_s0, 4  ;;  %s9_s14 = int_to_ptr.vmem [resolvable:$true] %s8_s14 }
   0x2   :  { %s681_s15 = scalar_lea.vmem %s9_s14, 64  ;;  %p686_p1 = scmp.lt.s32.totalorder %s9_s14, %s9_s14 }
   0x3   :  { %p682_p0 = scmp.ne.s32.totalorder %s9_s14, %s681_s15  ;;  %p687_p2 = scmp.lt.s32.totalorder %s681_s15, %s681_s15 }
   0x5   :  { %p688_p3 = por %p687_p2, %p686_p1 }
   0x7   :  { %p689_p4 = pnand %p688_p3, %p682_p0 }
   0x9   :  { %692 = shalt.err (!%p689_p4)  }
   0xa   :  { %s719_s16 = smov [#allocation3]  }
   0xb   :  { %11 = dma.vmem_to_smem %s9_s14, 64, %s719_s16, [#allocation2] }
   0xc   :  { %705 = dma.done.wait [#allocation2], 64 }
   0xd   :  { %706 = vsyncadd [#allocation2], 4294967232 }
   0xe   :  { %13 = sfence }
   0xf   :  { %s744_s17 = smov 0   ;;  %s746_s18 = smov 0  }
  0x10   :  { %s748_s19 = smov 0  }
  0x11 LB: > { %s31_s0 = sadd.s32 1, %s713_s18  ;;  %p586_p5 = scmp.ge.s32.totalorder %s717_s19, 1  ;;  %s717_s19 = sphi %s748_s19, %s19_s19   ;;  %s713_s18 = sphi %s746_s18, %s1054_s18   ;;  %s709_s17 = sphi %s744_s17, %s1053_s17  }
  0x12   : > { %p33_p6 = scmp.ge.s32.totalorder %s31_s0, 3  ;;  %p155_p7 = scmp.lt.s32.totalorder %s717_s19, 4 }
  0x14   : > { %s1056_s0 = smov (%p33_p6, %s31_s0), 0  ;;  %p156_p8 = pnand %p586_p5, %p155_p7 }
  0x15   : > { %p191_p9 = scmp.lt.s32.totalorder (!%p156_p8), %s709_s17, 2  ;;  %v223_v0 = vlaneseq (!%p156_p8)  ;;  %s762_s20 = sshll.u32 (!%p156_p8), %s709_s17, 7  ;;  %v720_v18 = vmov (!%p156_p8), 0.0  }
  0x16   : > { %159 = sbr.rel (%p156_p8) target bundleno = 101 (0x65), region = 28  ;;  %s765_s21 = sld [smem:[#allocation3 + %s762_s20]] (!%p156_p8) }
  0x17   : > { %v224_v1 = vshrl.u32 (!%p156_p8), %v223_v0, 7  ;;  %v226_v2 = vand.u32 (!%p156_p8), 127, %v223_v0  ;;  %s219_s22 = sadd.s32 (!%p156_p8), 2, %s762_s20  ;;  %s217_s4 = sadd.s32 (!%p156_p8), 1, %s762_s20 }
  0x18   : > { %s770_s23 = sld [smem:[#allocation3 + %s219_s22]] (!%p156_p8)  ;;  %s221_s6 = sadd.s32 (!%p156_p8), 3, %s762_s20 }
  0x19   : > { %v227_v3 = vmul.u32 (!%p156_p8), 128, %v224_v1  ;;  %s850_s10 = sld [smem:[#allocation3 + %s221_s6]] (!%p156_p8) }
  0x1a   : > { %s854_s11 = sld [smem:[#allocation3 + %s217_s4]] (!%p156_p8) }
  0x1b   : > { %v228_v4 = vadd.s32 (!%p156_p8), %v227_v3, %v226_v2 }
  0x1c   : > { %v280_v15 = vstv (!%p156_p8), %s765_s21 }
  0x1d   : > { %s1058_s17 = smov (!%p191_p9, %s709_s17), 2  ;;  %vm250_vm0 = vcmp.lt.s32.totalorder %v228_v4, 512  ;;  %v366_v8 = vadd.s32 1024, %v228_v4 }
  0x1e   : > { %s617_s24 = smul.u32 80, %s1058_s17  ;;  %v323_v29 = vstv %s770_s23 }
  0x1f   : > { %s618_s5 = smul.u32 40, %s1058_s17  ;;  %vm367_vm3 = vcmp.lt.s32.totalorder %v366_v8, 512 }
  0x20   : > { %s776_s27 = scalar_lea.vmem %s1038_s1, %s617_s24  ;;  %s781_s30 = scalar_lea.vmem %s1039_s2, %s617_s24 }
  0x21   : > { %v784_v5 = vld [vmem:[%s776_s27] sm:$0xff]  ;;  %v788_v7 = vld [vmem:[%s776_s27 + $0x8] sm:$0xff]  ;;  %v591_v13 = vld [vmem:[%s776_s27 + $0x10] sm:$0xff]  ;;  %s837_s9 = scalar_lea.vmem %s1040_s3, %s618_s5 }
  0x22   : > { %v239_v6 = vld [vmem:[%s781_s30] sm:$0xff]  ;;  %v256_v9 = vand.u32 2147483647, %v784_v5  ;;  %v359_v10 = vld [vmem:[%s781_s30 + $0x8] sm:$0xff]  ;;  %v373_v12 = vand.u32 2147483647, %v788_v7 }
  0x23   : > { %vm253_vm1 = vcmp.eq.f32.partialorder %v239_v6, 0.0  ;;  %vm370_vm4 = vcmp.eq.f32.partialorder %v359_v10, 0.0  ;;  %v592_v14 = vld [vmem:[%s776_s27 + $0x20] sm:$0xff]  ;;  %v812_v20 = vld [vmem:[%s776_s27 + $0x30] sm:$0xff]  ;;  %vm251_vm6 = vcmp.eq.f32.partialorder %v239_v6, 1.0  ;;  %v270_v22 = vmul.f32 0.5, %v591_v13 }
  0x24   : > { %vm796_vm2 = vmand %vm250_vm0, %vm253_vm1  ;;  %v257_v16 = vsub.f32 0.0, %v256_v9  ;;  %v815_v21 = vld [vmem:[%s776_s27 + $0x40] sm:$0xff]  ;;  %v374_v23 = vsub.f32 0.0, %v373_v12  ;;  %v820_v25 = vld [vmem:[%s781_s30 + $0x10] sm:$0xff]  ;;  %v274_v28 = vmul.f32 0.5, %v592_v14  ;;  %vm368_vm7 = vcmp.eq.f32.partialorder %v359_v10, 1.0 }
  0x25   : > { %vm805_vm5 = vmand %vm367_vm3, %vm370_vm4  ;;  %v346_v19 = vsel %vm796_vm2, 1.0, %v720_v18  ;;  %v823_v26 = vld [vmem:[%s781_s30 + $0x20] sm:$0xff]  ;;  %v597_v27 = vld [vmem:[%s781_s30 + $0x30] sm:$0xff]  ;;  %645 = vtanh.f32 %v270_v22  ;;  %v278_v33 = vmul.f32 1.442695, %v812_v20  ;;  %v255_v8 = vmax.f32 %v784_v5, 0.0 }
  0x26   : > { %v459_v24 = vsel %vm805_vm5, 1.0, %v720_v18  ;;  %v258_v30 = vmul.f32 1.442695, %v257_v16  ;;  %v828_v32 = vld [vmem:[%s781_s30 + $0x40] sm:$0xff]  ;;  %v599_v34 = vld [vmem:[%s776_s27 + $0x18] sm:$0xff]  ;;  %647 = vtanh.f32 %v274_v28  ;;  %v292_v37 = vmul.f32 0.5, %v597_v27  ;;  %vm858_vm8 = vmand %vm250_vm0, %vm251_vm6 }
  0x27   : > { %v460_v31 = vadd.f32 %v459_v24, %v346_v19  ;;  %v375_v35 = vmul.f32 1.442695, %v374_v23  ;;  %v282_v36 = vmul.f32 1.442695, %v815_v21  ;;  %v600_v38 = vld [vmem:[%s776_s27 + $0x28] sm:$0xff]  ;;  %v295_v39 = vmul.f32 0.5, %v828_v32  ;;  %vm880_vm9 = vmand %vm367_vm3, %vm368_vm7 }
  0x28   : > { %649 = vpow2.f32 %v258_v30  ;;  %v843_v40 = vld [vmem:[%s776_s27 + $0x38] sm:$0xff]  ;;  %v846_v41 = vld [vmem:[%s776_s27 + $0x48] sm:$0xff]  ;;  %v863_v43 = vsub.f32 %v820_v25, %v292_v37  ;;  %v866_v44 = vadd.f32 %v820_v25, %v292_v37  ;;  %v387_v47 = vmul.f32 0.5, %v599_v34 }
  0x29   : > { %651 = vpow2.f32 %v375_v35  ;;  %v605_v45 = vld [vmem:[%s781_s30 + $0x38] sm:$0xff]  ;;  %v870_v46 = vld [vmem:[%s781_s30 + $0x48] sm:$0xff]  ;;  %608 = vst [vmem:[%s837_s9 + $0x8] sm:$0xff] %v460_v31  ;;  %v874_v48 = vsub.f32 %v823_v26, %v295_v39  ;;  %v877_v49 = vadd.f32 %v823_v26, %v295_v39  ;;  %v391_v51 = vmul.f32 0.5, %v600_v38 }
  0x2a   : > { %653 = vpow2.f32 %v278_v33  ;;  %v311_v52 = vsub.f32 %v866_v44, %v863_v43  ;;  %v887_v53 = vld [vmem:[%s781_s30 + $0x18] sm:$0xff]  ;;  %v395_v54 = vmul.f32 1.442695, %v843_v40  ;;  %v398_v55 = vmul.f32 1.442695, %v846_v41  ;;  %v894_v57 = vld [vmem:[%s781_s30 + $0x28] sm:$0xff] }
  0x2b   : > { %655 = vpow2.f32 %v282_v36  ;;  %v312_v56 = vsub.f32 %v877_v49, %v874_v48  ;;  %v407_v58 = vmul.f32 0.5, %v605_v45  ;;  %v410_v59 = vmul.f32 0.5, %v870_v46 }
  0x2c   : > { %657 = vtanh.f32 %v387_v47  ;;  %v350_v60 = vsel %vm858_vm8, 1.0, %v720_v18  ;;  %v463_v61 = vsel %vm880_vm9, 1.0, %v720_v18  ;;  %v324_v62 = vmul.f32 %v597_v27, %v323_v29 }
  0x2d   : > { %659 = vtanh.f32 %v391_v51  ;;  %v903_v63 = vmul.f32 %v312_v56, %v311_v52  ;;  %v906_v0 = vsub.f32 %v887_v53, %v407_v58  ;;  %v909_v1 = vadd.f32 %v887_v53, %v407_v58 }
  0x2e   : > { %661 = vpow2.f32 %v395_v54  ;;  %v912_v2 = vsub.f32 %v894_v57, %v410_v59  ;;  %v915_v3 = vadd.f32 %v894_v57, %v410_v59  ;;  %v464_v4 = vadd.f32 %v463_v61, %v350_v60 }
  0x2f   : > { %663 = vpow2.f32 %v398_v55  ;;  %v646_v6 = vpop.eup %645  ;;  %v372_v9 = vmax.f32 %v788_v7, 0.0  ;;  %v325_v10 = vadd.f32 1e-16, %v324_v62  ;;  %v328_v12 = vstv %s850_s10 }
  0x30   : > { %v648_v13 = vpop.eup %647  ;;  %v272_v14 = vmul.f32 0.5, %v646_v6  ;;  %v284_v16 = vstv %s854_s11  ;;  %v314_v18 = vand.u32 2147483647, %v903_v63  ;;  %v426_v23 = vsub.f32 %v909_v1, %v906_v0  ;;  %612 = vst [vmem:[%s837_s9 + $0x18] sm:$0xff] %v464_v4 }
  0x31   : > { %v276_v22 = vmul.f32 0.5, %v648_v13  ;;  %v427_v24 = vsub.f32 %v915_v3, %v912_v2  ;;  %v329_v27 = vmul.f32 %v828_v32, %v328_v12  ;;  %665 = vlog2.f32 %v325_v10 }
  0x32   : > { %v650_v19 = vpop.eup %649  ;;  %v932_v38 = vmul.f32 %v605_v45, %v323_v29  ;;  %v934_v51 = vadd.f32 0.5, %v272_v14 }
  0x33   : > { %v652_v28 = vpop.eup %651  ;;  %v260_v30 = vadd.f32 1.0, %v650_v19  ;;  %v263_v31 = vmul.f32 -0.5, %v650_v19  ;;  %v266_v33 = vand.u32 2147483647, %v650_v19  ;;  %v938_v55 = vadd.f32 0.5, %v276_v22 }
  0x34   : > { %v654_v34 = vpop.eup %653  ;;  %v377_v35 = vadd.f32 1.0, %v652_v28  ;;  %v380_v36 = vmul.f32 -0.5, %v652_v28  ;;  %v383_v37 = vand.u32 2147483647, %v652_v28  ;;  %v948_v13 = vmul.f32 %v427_v24, %v426_v23 }
  0x35   : > { %v656_v39 = vpop.eup %655  ;;  %667 = vlog2.f32 %v260_v30  ;;  %v264_v47 = vadd.f32 1.0, %v263_v31  ;;  %v281_v32 = vmul.f32 %v654_v34, %v280_v15  ;;  %vm940_vm10 = vcmp.lt.f32.partialorder %v266_v33, 0.0004427343 }
  0x36   : > { %v658_v52 = vpop.eup %657  ;;  %669 = vlog2.f32 %v377_v35  ;;  %v381_v54 = vadd.f32 1.0, %v380_v36  ;;  %v285_v56 = vmul.f32 %v656_v39, %v284_v16  ;;  %vm944_vm11 = vcmp.lt.f32.partialorder %v383_v37, 0.0004427343 }
  0x37   : > { %v660_v58 = vpop.eup %659  ;;  %v265_v59 = vmul.f32 %v650_v19, %v264_v47  ;;  %v286_v29 = vmul.f32 0.5, %v281_v32  ;;  %v389_v45 = vmul.f32 0.5, %v658_v52  ;;  %v333_v11 = vsub.f32 %v934_v51, %v820_v25 }
  0x38   : > { %v662_v61 = vpop.eup %661  ;;  %v382_v62 = vmul.f32 %v652_v28, %v381_v54  ;;  %v289_v6 = vmul.f32 0.5, %v285_v56  ;;  %v393_v10 = vmul.f32 0.5, %v660_v58 }
  0x39   : > { %v664_v14 = vpop.eup %663  ;;  %v287_v22 = vsub.f32 %v934_v51, %v286_v29  ;;  %v288_v19 = vadd.f32 %v286_v29, %v934_v51  ;;  %v952_v30 = vadd.f32 0.5, %v389_v45  ;;  %v397_v31 = vmul.f32 %v662_v61, %v280_v15 }
  0x3a   : > { %v290_v33 = vsub.f32 %v938_v55, %v289_v6  ;;  %v291_v28 = vadd.f32 %v289_v6, %v938_v55  ;;  %v958_v34 = vadd.f32 0.5, %v393_v10  ;;  %v400_v35 = vmul.f32 %v664_v14, %v284_v16 }
  0x3b   : > { %v298_v36 = vmin.f32 %v288_v19, %v866_v44  ;;  %v299_v23 = vmax.f32 %v287_v22, %v863_v43  ;;  %v307_v24 = vsub.f32 %v288_v19, %v287_v22  ;;  %v401_v37 = vmul.f32 0.5, %v397_v31  ;;  %v666_v15 = vpop.eup %665 }
  0x3c   : > { %v302_v39 = vmin.f32 %v291_v28, %v877_v49  ;;  %v303_v47 = vmax.f32 %v290_v33, %v874_v48  ;;  %v308_v32 = vsub.f32 %v291_v28, %v290_v33  ;;  %v404_v52 = vmul.f32 0.5, %v400_v35 }
  0x3d   : > { %v300_v54 = vsub.f32 %v298_v36, %v299_v23  ;;  %v402_v56 = vsub.f32 %v952_v30, %v401_v37  ;;  %v403_v58 = vadd.f32 %v401_v37, %v952_v30  ;;  %v330_v29 = vadd.f32 1e-16, %v329_v27 }
  0x3e   : > { %v304_v16 = vsub.f32 %v302_v39, %v303_v47  ;;  %v309_v45 = vmul.f32 %v308_v32, %v307_v24  ;;  %v405_v44 = vsub.f32 %v958_v34, %v404_v52  ;;  %v406_v43 = vadd.f32 %v404_v52, %v958_v34 }
  0x3f   : > { %v668_v61 = vpop.eup %667  ;;  %v301_v6 = vmax.f32 %v300_v54, 0.0  ;;  %v413_v49 = vmin.f32 %v403_v58, %v909_v1  ;;  %v414_v48 = vmax.f32 %v402_v56, %v906_v0  ;;  %v422_v10 = vsub.f32 %v403_v58, %v402_v56 }
  0x40   : > { %v670_v14 = vpop.eup %669  ;;  %v262_v22 = vmul.f32 0.6931472, %v668_v61  ;;  %v305_v19 = vmax.f32 %v304_v16, 0.0  ;;  %v310_v31 = vand.u32 2147483647, %v309_v45  ;;  %v417_v33 = vmin.f32 %v406_v43, %v915_v3 }
  0x41   : > { %v379_v27 = vmul.f32 0.6931472, %v670_v14  ;;  %v415_v28 = vsub.f32 %v413_v49, %v414_v48  ;;  %v418_v35 = vmax.f32 %v405_v44, %v912_v2  ;;  %v423_v36 = vsub.f32 %v406_v43, %v405_v44 }
  0x42   : > { %v974_v23 = vsel %vm940_vm10, %v265_v59, %v262_v22  ;;  %v306_v1 = vmul.f32 %v305_v19, %v301_v6  ;;  %v315_v0 = vadd.f32 %v314_v18, %v310_v31  ;;  %v429_v24 = vand.u32 2147483647, %v948_v13 }
  0x43   : > { %v269_v3 = vadd.f32 %v974_v23, %v255_v8  ;;  %v984_v37 = vsel %vm944_vm11, %v382_v62, %v379_v27  ;;  %v416_v2 = vmax.f32 %v415_v28, 0.0  ;;  %v419_v39 = vsub.f32 %v417_v33, %v418_v35 }
  0x44   : > { %v386_v59 = vadd.f32 %v984_v37, %v372_v9  ;;  %v316_v60 = vsub.f32 %v315_v0, %v306_v1  ;;  %v424_v47 = vmul.f32 %v423_v36, %v422_v10  ;;  %671 = vlog2.f32 %v330_v29 }
  0x45   : > { %v344_v63 = vsel %vm796_vm2, %v269_v3, 0.0  ;;  %v420_v18 = vmax.f32 %v419_v39, 0.0  ;;  %v442_v13 = vmul.f32 %v870_v46, %v328_v12  ;;  %v327_v58 = vmul.f32 0.6931472, %v666_v15 }
  0x46   : > { %v457_v62 = vsel %vm805_vm5, %v386_v59, 0.0  ;;  %v317_v4 = vadd.f32 1e-06, %v316_v60  ;;  %v425_v32 = vand.u32 2147483647, %v424_v47  ;;  %v335_v16 = vsub.f32 %v938_v55, %v823_v26 }
  0x47   : > { %v458_v52 = vadd.f32 %v457_v62, %v344_v63  ;;  %v421_v54 = vmul.f32 %v420_v18, %v416_v2  ;;  %v439_v29 = vadd.f32 1e-16, %v932_v38  ;;  %v443_v45 = vadd.f32 1e-16, %v442_v13 }
  0x48   : > { %673 = vrcp.f32 %v317_v4  ;;  %v430_v56 = vadd.f32 %v429_v24, %v425_v32  ;;  %v334_v12 = vmul.f32 %v333_v11, %v333_v11  ;;  %v336_v44 = vmul.f32 %v335_v16, %v335_v16 }
  0x49   : > { %675 = vlog2.f32 %v439_v29  ;;  %478 = vst [vmem:[%s837_s9] sm:$0xff] %v458_v52  ;;  %v338_v43 = vsub.f32 %v812_v20, %v327_v58  ;;  %v446_v38 = vsub.f32 %v952_v30, %v887_v53  ;;  %v448_v25 = vsub.f32 %v958_v34, %v894_v57 }
  0x4a   : > { %v431_v46 = vsub.f32 %v430_v56, %v421_v54  ;;  %677 = vlog2.f32 %v443_v45  ;;  %v337_v26 = vadd.f32 %v336_v44, %v334_v12 }
  0x4b   : > { %v339_v51 = vmul.f32 %v338_v43, %v338_v43  ;;  %v447_v48 = vmul.f32 %v446_v38, %v446_v38  ;;  %v449_v10 = vmul.f32 %v448_v25, %v448_v25 }
  0x4c   : > { %v432_v17 = vadd.f32 1e-06, %v431_v46 }
  0x4d   : > { %v340_v19 = vadd.f32 %v339_v51, %v337_v26  ;;  %v450_v57 = vadd.f32 %v449_v10, %v447_v48 }
  0x4e   : > { %v672_v61 = vpop.eup %671  ;;  %679 = vrcp.f32 %v432_v17 }
  0x4f   : > { %v332_v15 = vmul.f32 0.6931472, %v672_v61 }
  0x51   : > { %v341_v55 = vsub.f32 %v815_v21, %v332_v15 }
  0x52   : > { %v674_v6 = vpop.eup %673 }
  0x53   : > { %v319_v49 = vmul.f32 %v674_v6, %v306_v1  ;;  %v676_v14 = vpop.eup %675  ;;  %v342_v31 = vmul.f32 %v341_v55, %v341_v55 }
  0x54   : > { %v678_v22 = vpop.eup %677  ;;  %v441_v33 = vmul.f32 0.6931472, %v676_v14 }
  0x55   : > { %v320_v20 = vmul.f32 %v319_v49, %v784_v5  ;;  %v445_v27 = vmul.f32 0.6931472, %v678_v22  ;;  %v343_v35 = vadd.f32 %v342_v31, %v340_v19 }
  0x56   : > { %v451_v30 = vsub.f32 %v843_v40, %v441_v33 }
  0x57   : > { %v321_v53 = vsub.f32 %v255_v8, %v320_v20  ;;  %v454_v21 = vsub.f32 %v846_v41, %v445_v27  ;;  %v352_v40 = vsel %vm858_vm8, %v343_v35, 0.0 }
  0x58   : > { %v680_v34 = vpop.eup %679  ;;  %v452_v36 = vmul.f32 %v451_v30, %v451_v30 }
  0x59   : > { %v434_v28 = vmul.f32 %v680_v34, %v421_v54  ;;  %v455_v1 = vmul.f32 %v454_v21, %v454_v21  ;;  %v322_v0 = vadd.f32 %v321_v53, %v974_v23 }
  0x5a   : > { %v453_v3 = vadd.f32 %v452_v36, %v450_v57 }
  0x5b   : > { %v435_v24 = vmul.f32 %v434_v28, %v788_v7  ;;  %v348_v41 = vsel %vm858_vm8, %v322_v0, 0.0 }
  0x5c   : > { %v456_v8 = vadd.f32 %v455_v1, %v453_v3 }
  0x5d   : > { %v436_v5 = vsub.f32 %v372_v9, %v435_v24 }
  0x5e   : > { %v465_v39 = vsel %vm880_vm9, %v456_v8, 0.0 }
  0x5f   : > { %v437_v2 = vadd.f32 %v436_v5, %v984_v37  ;;  %v466_v59 = vadd.f32 %v465_v39, %v352_v40 }
  0x61   : > { %v461_v23 = vsel %vm880_vm9, %v437_v2, 0.0  ;;  %614 = vst [vmem:[%s837_s9 + $0x20] sm:$0xff] %v466_v59 }
  0x62   : > { %v462_v60 = vadd.f32 %v461_v23, %v348_v41 }
  0x64   : > { %610 = vst [vmem:[%s837_s9 + $0x10] sm:$0xff] %v462_v60 }
  0x65 PF: > { %s19_s19 = sadd.s32 1, %s717_s19   ;;  %s1053_s17 = smov %s713_s18 }
  0x66   : > { %p16_p10 = scmp.ge.s32.totalorder %s19_s19, 5   ;;  %s1054_s18 = smov %s1056_s0 }
  0x68   :  { %18 = sbr.rel (!%p16_p10) target bundleno = 17 (0x11), region = 77 }

</bundles_post_ra>
